<compile_context>
chip_gen: v6e
topology: v6e:2x2x1
jax: 0.10.0
libtpu: 0.0.40
codegen_flags: <defaults>
</compile_context>

<pallas_src>
import functools
import math

import jax
import jax.numpy as jnp
from jax import lax
from jax.experimental import pallas as pl
from jax.experimental.pallas import tpu as pltpu


def _pick_tile(dim, candidates):
    """Largest candidate that evenly divides `dim`, else the full dim."""
    for c in candidates:
        if c <= dim and dim % c == 0:
            return c
    return dim


# ----------------------------------------------------------------------------
# Kernel 1 & 3: tiled dense projection  y = x @ W^T + b   (W in PyTorch layout)
# ----------------------------------------------------------------------------
def _proj_kernel(x_ref, w_ref, b_ref, o_ref, acc_ref):
    @pl.when(pl.program_id(2) == 0)
    def _init():
        acc_ref[...] = jnp.zeros_like(acc_ref)

    # x: (tm, tk), w: (tn, tk)  ->  (tm, tn)   (trans_b form, native on the MXU)
    acc_ref[...] += lax.dot_general(
        x_ref[...],
        w_ref[...],
        dimension_numbers=(((1,), (1,)), ((), ())),
        preferred_element_type=jnp.float32,
    )

    @pl.when(pl.program_id(2) == pl.num_programs(2) - 1)
    def _finalize():
        o_ref[...] = (acc_ref[...] + b_ref[...]).astype(o_ref.dtype)


def dense_proj(x2d, w, b):
    """x2d: (M, K) f32, w: (Nout, K) f32 (PyTorch layout), b: (Nout,) -> (M, Nout)."""
    M, K = x2d.shape
    Nout = w.shape[0]

    tm = _pick_tile(M, (256, 128, 64, 32, 16, 8))      # sublane dim: mult of 8 or full
    tn = _pick_tile(Nout, (512, 384, 256, 128))        # lane dim: mult of 128 or full
    tk = _pick_tile(K, (512, 256, 128))                # lane dim: mult of 128 or full

    b2d = b.reshape(1, Nout)
    grid = (M // tm, Nout // tn, K // tk)               # reduction axis (k) innermost

    cost = pl.CostEstimate(
        flops=2 * M * K * Nout,
        transcendentals=0,
        bytes_accessed=4 * (M * K + Nout * K + Nout + M * Nout),
    )

    return pl.pallas_call(
        _proj_kernel,
        out_shape=jax.ShapeDtypeStruct((M, Nout), jnp.float32),
        grid_spec=pltpu.PrefetchScalarGridSpec(
            num_scalar_prefetch=0,
            grid=grid,
            in_specs=[
                pl.BlockSpec((tm, tk), lambda i, j, k: (i, k)),   # x tile
                pl.BlockSpec((tn, tk), lambda i, j, k: (j, k)),   # W tile (Nout, K)
                pl.BlockSpec((1, tn), lambda i, j, k: (0, j)),    # bias tile
            ],
            out_specs=pl.BlockSpec((tm, tn), lambda i, j, k: (i, j)),
            scratch_shapes=[pltpu.VMEM((tm, tn), jnp.float32)],
        ),
        compiler_params=pltpu.CompilerParams(
            dimension_semantics=("parallel", "parallel", "arbitrary"),
            vmem_limit_bytes=64 * 1024 * 1024,
        ),
        cost_estimate=cost,
    )(x2d, w, b2d)


# ----------------------------------------------------------------------------
# Kernel 2: flash (online-softmax) attention, all heads of one batch per step
# ----------------------------------------------------------------------------
def _flash_kernel(q_ref, k_ref, v_ref, o_ref, m_ref, l_ref, acc_ref, *, scale):
    ki = pl.program_id(2)

    @pl.when(ki == 0)
    def _init():
        m_ref[...] = jnp.full_like(m_ref, -jnp.inf)
        l_ref[...] = jnp.zeros_like(l_ref)
        acc_ref[...] = jnp.zeros_like(acc_ref)

    q = q_ref[0] * scale          # (H, tq, Dh)
    k = k_ref[0]                  # (H, tkv, Dh)
    v = v_ref[0]                  # (H, tkv, Dh)

    # batched QK^T: contraction over Dh, no explicit transpose (trans_b on MXU)
    s = jnp.einsum("hqd,hkd->hqk", q, k, preferred_element_type=jnp.float32)

    m_prev = m_ref[...]                                    # (H, tq, 1)
    m_new = jnp.maximum(m_prev, s.max(axis=-1, keepdims=True))
    alpha = jnp.exp(m_prev - m_new)
    p = jnp.exp(s - m_new)                                 # (H, tq, tkv)
    l_ref[...] = alpha * l_ref[...] + p.sum(axis=-1, keepdims=True)
    acc_ref[...] = alpha * acc_ref[...] + jnp.einsum(
        "hqk,hkd->hqd", p, v, preferred_element_type=jnp.float32
    )
    m_ref[...] = m_new

    @pl.when(ki == pl.num_programs(2) - 1)
    def _finalize():
        inv_l = pl.reciprocal(l_ref[...], approx=False)    # one reciprocal per row
        o_ref[0] = (acc_ref[...] * inv_l).astype(o_ref.dtype)


def flash_attention(q, k, v, scale):
    """q, k, v: (N, H, L, Dh) f32 -> (N, H, L, Dh)."""
    N, H, L, Dh = q.shape
    tq = _pick_tile(L, (128, 64, 32, 16, 8))
    tkv = _pick_tile(L, (256, 128, 64, 32, 16, 8))
    grid = (N, L // tq, L // tkv)                          # KV (reduction) axis last

    q_spec = pl.BlockSpec((1, H, tq, Dh), lambda b, qi, ki: (b, 0, qi, 0))
    kv_spec = pl.BlockSpec((1, H, tkv, Dh), lambda b, qi, ki: (b, 0, ki, 0))
    o_spec = pl.BlockSpec((1, H, tq, Dh), lambda b, qi, ki: (b, 0, qi, 0))

    cost = pl.CostEstimate(
        flops=4 * N * H * L * L * Dh,
        transcendentals=N * H * L * L,
        bytes_accessed=4 * 4 * N * H * L * Dh,
    )

    return pl.pallas_call(
        functools.partial(_flash_kernel, scale=scale),
        out_shape=jax.ShapeDtypeStruct((N, H, L, Dh), jnp.float32),
        grid_spec=pltpu.PrefetchScalarGridSpec(
            num_scalar_prefetch=0,
            grid=grid,
            in_specs=[q_spec, kv_spec, kv_spec],
            out_specs=o_spec,
            scratch_shapes=[
                pltpu.VMEM((H, tq, 1), jnp.float32),    # running max
                pltpu.VMEM((H, tq, 1), jnp.float32),    # running denom
                pltpu.VMEM((H, tq, Dh), jnp.float32),   # output accumulator
            ],
        ),
        compiler_params=pltpu.CompilerParams(
            dimension_semantics=("parallel", "parallel", "arbitrary"),
            vmem_limit_bytes=64 * 1024 * 1024,
        ),
        cost_estimate=cost,
    )(q, k, v)


# ----------------------------------------------------------------------------
# Full forward pass
# ----------------------------------------------------------------------------
def multihead_self_attention(x, params, num_heads):
    """
    x: (L, N, E) f32 (batch_first=False).
    params: in_proj_weight (3E, E), in_proj_bias (3E,),
            out_proj_weight (E, E), out_proj_bias (E,)   (PyTorch layouts).
    Returns (L, N, E).
    """
    L, N, E = x.shape
    H = num_heads
    Dh = E // H
    scale = 1.0 / math.sqrt(Dh)

    # ---- in-projection (no weight transpose in HBM; trans_b inside the kernel)
    x2d = x.reshape(L * N, E)
    qkv = dense_proj(x2d, params["in_proj_weight"], params["in_proj_bias"])  # (L*N, 3E)

    # ---- split q/k/v and heads: (L, N, 3, H, Dh) -> (3, N, H, L, Dh)
    # TODO(synk): fold the head split/merge into the attention BlockSpecs to remove
    # these two XLA transpose passes over the activations (extra HBM traffic).
    qkv = qkv.reshape(L, N, 3, H, Dh)
    qkv = jnp.transpose(qkv, (2, 1, 3, 0, 4))
    q, k, v = qkv[0], qkv[1], qkv[2]

    # ---- flash attention, all H heads of a batch element per grid step
    oh = flash_attention(q, k, v, scale)                    # (N, H, L, Dh)

    # ---- merge heads back: (N, H, L, Dh) -> (L*N, E)
    o = jnp.transpose(oh, (2, 0, 1, 3)).reshape(L * N, E)

    # ---- out-projection
    y = dense_proj(o, params["out_proj_weight"], params["out_proj_bias"])
    return y.reshape(L, N, E)


# ----------------------------------------------------------------------------
# Deterministic parameter init (shapes match nn.MultiheadAttention)
# ----------------------------------------------------------------------------
def init_params(key, embed_dim):
    E = embed_dim
    k1, k2 = jax.random.split(key, 2)
    lim_in = math.sqrt(6.0 / (E + 3 * E))
    lim_out = 1.0 / math.sqrt(E)
    return {
        "in_proj_weight": jax.random.uniform(k1, (3 * E, E), jnp.float32, -lim_in, lim_in),
        "in_proj_bias": jnp.zeros((3 * E,), jnp.float32),
        "out_proj_weight": jax.random.uniform(k2, (E, E), jnp.float32, -lim_out, lim_out),
        "out_proj_bias": jnp.zeros((E,), jnp.float32),
    }


# ----------------------------------------------------------------------------
# Pure-JAX reference
# ----------------------------------------------------------------------------
def reference(x, params, num_heads):
    L, N, E = x.shape
    H = num_heads
    Dh = E // H
    qkv = x @ params["in_proj_weight"].T + params["in_proj_bias"]
    q, k, v = jnp.split(qkv, 3, axis=-1)

    def sh(t):
        return jnp.transpose(t.reshape(L, N, H, Dh), (1, 2, 0, 3))

    qh, kh, vh = sh(q), sh(k), sh(v)
    s = jnp.einsum("nhld,nhmd->nhlm", qh, kh) / math.sqrt(Dh)
    p = jax.nn.softmax(s, axis=-1)
    o = jnp.einsum("nhlm,nhmd->nhld", p, vh)
    o = jnp.transpose(o, (2, 0, 1, 3)).reshape(L, N, E)
    return o @ params["out_proj_weight"].T + params["out_proj_bias"]


if __name__ == "__main__":
    seq_len, batch, embed_dim, num_heads = 8, 2, 32, 4

    key = jax.random.PRNGKey(0)
    kx, kp = jax.random.split(key)
    x = jax.random.normal(kx, (seq_len, batch, embed_dim), jnp.float32)
    params = init_params(kp, embed_dim)

    out = jax.block_until_ready(multihead_self_attention(x, params, num_heads))
    ref = reference(x, params, num_heads)

    assert out.shape == (seq_len, batch, embed_dim)
    assert jnp.allclose(out, ref, atol=1e-4, rtol=1e-4), float(jnp.max(jnp.abs(out - ref)))

    print("KERNEL_OK")
</pallas_src>

<mosaic_0001>
module attributes {stable_mosaic.version = 11 : i64} {
  func.func @_proj_kernel(%arg0: i32, %arg1: i32, %arg2: i32, %arg3: memref<16x32xf32, #tpu.memory_space<vmem>>, %arg4: memref<96x32xf32, #tpu.memory_space<vmem>>, %arg5: memref<1x96xf32, #tpu.memory_space<vmem>>, %arg6: memref<16x96xf32, #tpu.memory_space<vmem>>, %arg7: memref<16x96xf32, #tpu.memory_space<vmem>>) attributes {dimension_semantics = [#tpu.dimension_semantics<parallel>, #tpu.dimension_semantics<parallel>, #tpu.dimension_semantics<arbitrary>], iteration_bounds = array<i64: 1, 1, 1>, scalar_prefetch = 0 : i64, scratch_operands = 1 : i64, tpu.core_type = #tpu.core_type<tc>, window_params = [{transform_indices = @transform_0, window_bounds = array<i64: 16, 32>}, {transform_indices = @transform_1, window_bounds = array<i64: 96, 32>}, {transform_indices = @transform_2, window_bounds = array<i64: 1, 96>}, {transform_indices = @transform_3, window_bounds = array<i64: 16, 96>}]} {
    %c0_i32 = arith.constant 0 : i32
    %0 = arith.cmpi eq, %arg2, %c0_i32 : i32
    %1 = arith.extui %0 : i1 to i32
    %c0_i32_0 = arith.constant 0 : i32
    %2 = arith.cmpi ne, %1, %c0_i32_0 : i32
    scf.if %2 {
      %cst_10 = arith.constant 0.000000e+00 : f32
      %12 = vector.broadcast %cst_10 : f32 to vector<16x96xf32>
      %c0_11 = arith.constant 0 : index
      %c0_12 = arith.constant 0 : index
      %13 = vector.load %arg7[%c0_11, %c0_12] : memref<16x96xf32, #tpu.memory_space<vmem>>, vector<16x96xf32>
      tpu.vector_store %arg7[%c0_11, %c0_12], %12 {strides = array<i32>} : memref<16x96xf32, #tpu.memory_space<vmem>>, vector<16x96xf32>,
    } else {
    }
    %c0 = arith.constant 0 : index
    %c0_1 = arith.constant 0 : index
    %3 = vector.load %arg7[%c0, %c0_1] : memref<16x96xf32, #tpu.memory_space<vmem>>, vector<16x96xf32>
    %c0_2 = arith.constant 0 : index
    %c0_3 = arith.constant 0 : index
    %4 = vector.load %arg3[%c0_2, %c0_3] : memref<16x32xf32, #tpu.memory_space<vmem>>, vector<16x32xf32>
    %c0_4 = arith.constant 0 : index
    %c0_5 = arith.constant 0 : index
    %5 = vector.load %arg4[%c0_4, %c0_5] : memref<96x32xf32, #tpu.memory_space<vmem>>, vector<96x32xf32>
    %cst = arith.constant dense<0.000000e+00> : vector<16x96xf32>
    %6 = tpu.matmul %4, %5, %cst {dimension_numbers = #tpu.dot_dimension_numbers<[1], [1], [0], [0], [0, 0, 1, 0], [], []>} : vector<16x32xf32>, vector<96x32xf32>, vector<16x96xf32> -> vector<16x96xf32>
    %7 = arith.addf %3, %6 : vector<16x96xf32>
    %c0_6 = arith.constant 0 : index
    %c0_7 = arith.constant 0 : index
    %8 = vector.load %arg7[%c0_6, %c0_7] : memref<16x96xf32, #tpu.memory_space<vmem>>, vector<16x96xf32>
    tpu.vector_store %arg7[%c0_6, %c0_7], %7 {strides = array<i32>} : memref<16x96xf32, #tpu.memory_space<vmem>>, vector<16x96xf32>,
    %c0_i32_8 = arith.constant 0 : i32
    %9 = arith.cmpi eq, %arg2, %c0_i32_8 : i32
    %10 = arith.extui %9 : i1 to i32
    %c0_i32_9 = arith.constant 0 : i32
    %11 = arith.cmpi ne, %10, %c0_i32_9 : i32
    scf.if %11 {
      %c0_10 = arith.constant 0 : index
      %c0_11 = arith.constant 0 : index
      %12 = vector.load %arg7[%c0_10, %c0_11] : memref<16x96xf32, #tpu.memory_space<vmem>>, vector<16x96xf32>
      %c0_12 = arith.constant 0 : index
      %c0_13 = arith.constant 0 : index
      %13 = vector.load %arg5[%c0_12, %c0_13] : memref<1x96xf32, #tpu.memory_space<vmem>>, vector<1x96xf32>
      %14 = vector.broadcast %13 : vector<1x96xf32> to vector<16x96xf32>
      %15 = arith.addf %12, %14 : vector<16x96xf32>
      %c0_14 = arith.constant 0 : index
      %c0_15 = arith.constant 0 : index
      %16 = vector.load %arg6[%c0_14, %c0_15] : memref<16x96xf32, #tpu.memory_space<vmem>>, vector<16x96xf32>
      tpu.vector_store %arg6[%c0_14, %c0_15], %15 {strides = array<i32>} : memref<16x96xf32, #tpu.memory_space<vmem>>, vector<16x96xf32>,
    } else {
    }
    return
  }
  func.func @transform_0(%arg0: i32, %arg1: i32, %arg2: i32) -> (i32, i32) {
    %c0_i32 = arith.constant 0 : i32
    return %arg0, %arg2 : i32, i32
  }
  func.func @transform_1(%arg0: i32, %arg1: i32, %arg2: i32) -> (i32, i32) {
    %c0_i32 = arith.constant 0 : i32
    return %arg1, %arg2 : i32, i32
  }
  func.func @transform_2(%arg0: i32, %arg1: i32, %arg2: i32) -> (i32, i32) {
    %c0_i32 = arith.constant 0 : i32
    %c0_i32_0 = arith.constant 0 : i32
    return %c0_i32, %arg1 : i32, i32
  }
  func.func @transform_3(%arg0: i32, %arg1: i32, %arg2: i32) -> (i32, i32) {
    %c0_i32 = arith.constant 0 : i32
    return %arg0, %arg1 : i32, i32
  }
}

</mosaic_0001>

<bundles_post_ra>
// kernel: tpu_custom_call.1
= control target key start
LH: loop header
LB: loop body
LE: loop exit
PB: predicated region body
PF: predicated region fallthrough
CT: control target
= control target key end

     0   :  { %vm38_vm0 = vcmask 261120   ;;  %vm19_vm1 = vcmask 785408   ;;  %v275_v2 = vmov 0.0   ;;  %s379_s0 = inlined_call_operand.vmem [shape: f32[16,32], index: 0, kind: input, shape index: {}]   ;;  %s380_s1 = inlined_call_operand.vmem [shape: f32[96,32], index: 1, kind: input, shape index: {}]   ;;  %s381_s2 = inlined_call_operand.vmem [shape: f32[1,96], index: 2, kind: input, shape index: {}]   ;;  %s382_s3 = inlined_call_operand.hbm [shape: f32[16,96], index: 3, kind: output, shape index: {}]  }
   0x1   :  { %v37_v0 = vld [vmem:[%s380_s1 + $0x58] sm:$0xff]  ;;  %v36_v1 = vld [vmem:[%s380_s1 + $0x50] sm:$0xff]  ;;  %21 = vst.msk [vmem:[#allocation2 + $0x8] sm:$0xff] %vm19_vm1, %v275_v2  ;;  %20 = vst.msk [vmem:[#allocation2] sm:$0xff] %vm19_vm1, %v275_v2 }
   0x2   :  { %222 = vmatprep.subr.msk.mxu0 %vm38_vm0, %v37_v0  ;;  %v35_v3 = vld [vmem:[%s380_s1 + $0x48] sm:$0xff]  ;;  %v24_v4 = vld [vmem:[%s379_s0] sm:$0xff] }
   0x3   :  { %223 = vmatpush3.xpose.msk.msra.mxu0 %vm38_vm0, %v37_v0 }
   0x4   :  { %224 = vmatprep.subr.msk.mxu0 %vm38_vm0, %v36_v1 }
   0x5   :  { %8 = vsyncpa [#allocation4], 0  ;;  %246 = vmatprep.mubr.msk.f32.mxu0 %vm38_vm0, %v24_v4  ;;  %v34_v5 = vld [vmem:[%s380_s1 + $0x40] sm:$0xff]  ;;  %v33_v6 = vld [vmem:[%s380_s1 + $0x38] sm:$0xff]  ;;  %s276_s14 = smov [#allocation3]  }
   0x6   :  { %v32_v7 = vld [vmem:[%s380_s1 + $0x30] sm:$0xff]  ;;  %v31_v8 = vld [vmem:[%s380_s1 + $0x28] sm:$0xff]  ;;  %v30_v9 = vld [vmem:[%s380_s1 + $0x20] sm:$0xff]  ;;  %s182_s15 = sshll.u32 %s276_s14, 4  ;;  %s183_s15 = int_to_ptr.vmem [resolvable:$true] %s182_s15 }
   0x7   :  { %225 = vmatpush3.xpose.msk.msra.mxu0 %vm38_vm0, %v36_v1  ;;  %v29_v10 = vld [vmem:[%s380_s1 + $0x18] sm:$0xff]  ;;  %v28_v11 = vld [vmem:[%s380_s1 + $0x10] sm:$0xff]  ;;  %v27_v12 = vld [vmem:[%s380_s1 + $0x8] sm:$0xff]  ;;  %p258_p1 = scmp.lt.s32.totalorder %s183_s15, %s183_s15 }
   0x8   :  { %226 = vmatprep.subr.msk.mxu0 %vm38_vm0, %v35_v3  ;;  %v26_v13 = vld [vmem:[%s380_s1] sm:$0xff]  ;;  %v25_v14 = vld [vmem:[%s379_s0 + $0x8] sm:$0xff]  ;;  %s253_s0 = scalar_lea.vmem %s183_s15, 256 }
   0x9   :  { %v23_v15 = vld [vmem:[#allocation2 + $0x8] sm:$0xff]  ;;  %v22_v17 = vld [vmem:[#allocation2] sm:$0xff]  ;;  %p254_p0 = scmp.ne.s32.totalorder %s183_s15, %s253_s0  ;;  %p259_p2 = scmp.lt.s32.totalorder %s253_s0, %s253_s0 }
   0xa   :  { %v207_v21 = vld [vmem:[%s381_s2] ss:$0 sm:$0xff] }
   0xb   :  { %227 = vmatpush3.xpose.msk.msra.mxu0 %vm38_vm0, %v35_v3  ;;  %p260_p3 = por %p259_p2, %p258_p1 }
   0xc   :  { %228 = vmatprep.subr.msk.mxu0 %vm38_vm0, %v34_v5 }
   0xd   :  { %p261_p4 = pnand %p260_p3, %p254_p0 }
   0xf   :  { %229 = vmatpush3.xpose.msk.msra.mxu0 %vm38_vm0, %v34_v5 }
  0x10   :  { %230 = vmatprep.subr.msk.mxu0 %vm38_vm0, %v33_v6 }
  0x13   :  { %231 = vmatpush3.xpose.msk.msra.mxu0 %vm38_vm0, %v33_v6 }
  0x14   :  { %232 = vmatprep.subr.msk.mxu0 %vm38_vm0, %v32_v7 }
  0x17   :  { %233 = vmatpush3.xpose.msk.msra.mxu0 %vm38_vm0, %v32_v7 }
  0x18   :  { %234 = vmatprep.subr.msk.mxu0 %vm38_vm0, %v31_v8 }
  0x1b   :  { %235 = vmatpush3.xpose.msk.msra.mxu0 %vm38_vm0, %v31_v8 }
  0x1c   :  { %236 = vmatprep.subr.msk.mxu0 %vm38_vm0, %v30_v9 }
  0x1f   :  { %237 = vmatpush3.xpose.msk.msra.mxu0 %vm38_vm0, %v30_v9 }
  0x20   :  { %238 = vmatprep.subr.msk.mxu0 %vm38_vm0, %v29_v10 }
  0x23   :  { %239 = vmatpush3.xpose.msk.msra.mxu0 %vm38_vm0, %v29_v10 }
  0x24   :  { %240 = vmatprep.subr.msk.mxu0 %vm38_vm0, %v28_v11 }
  0x27   :  { %241 = vmatpush3.xpose.msk.msra.mxu0 %vm38_vm0, %v28_v11 }
  0x28   :  { %242 = vmatprep.subr.msk.mxu0 %vm38_vm0, %v27_v12 }
  0x2b   :  { %243 = vmatpush3.xpose.msk.msra.mxu0 %vm38_vm0, %v27_v12 }
  0x2c   :  { %244 = vmatprep.subr.msk.mxu0 %vm38_vm0, %v26_v13 }
  0x2f   :  { %245 = vmatpush3.xpose.msk.msra.mxu0 %vm38_vm0, %v26_v13 }
  0x32   :  { %247 = vmatmul.mubr.msk.f32.vlgmr.msra.gmra.mxu0 %vm38_vm0, %v25_v14 }
  0xf2   :  { %v248_v16 = vpop.f32.mrf.mxu0 }
  0xf3   :  { %v157_v18 = vadd.f32 %v248_v16, %v23_v15 }
  0xf4   :  { %v147_v19 = vpop.f32.mrf.mxu0 }
  0xf5   :  { %160 = vst.msk [vmem:[#allocation2 + $0x8] sm:$0xff] %vm19_vm1, %v157_v18  ;;  %v156_v20 = vadd.f32 %v147_v19, %v22_v17 }
  0xf7   :  { %159 = vst.msk [vmem:[#allocation2] sm:$0xff] %vm19_vm1, %v156_v20 }
  0xfc   :  { %v165_v22 = vld [vmem:[#allocation2 + $0x8] sm:$0xff] }
  0xfd   :  { %v174_v23 = vadd.f32 %v207_v21, %v165_v22 }
  0xfe   :  { %v164_v24 = vld [vmem:[#allocation2] sm:$0xff] }
  0xff   :  { %v173_v25 = vadd.f32 %v207_v21, %v164_v24  ;;  %176 = vst.msk [vmem:[#allocation3 + $0x8] sm:$0xff] %vm19_vm1, %v174_v23 }
 0x101   :  { %175 = vst.msk [vmem:[#allocation3] sm:$0xff] %vm19_vm1, %v173_v25 }
 0x102   :  { %264 = shalt.err (!%p261_p4)
}
 0x103   :  { %s277_s16 = smov 128   ;;  %s278_s2 = smov 8  }
 0x104   :  { %188 = dma.vmem_to_hbm [thread:$0]  %s183_s15, 256, %s382_s3, [#allocation4], %s277_s16, %s277_s16, %s278_s2  }
 0x105   :  { %273 = dma.done.wait [#allocation4], 256  }
 0x106   :  { %274 = vsyncadd [#allocation4], 4294967040 }
 0x107   :  { %192 = vsyncpa [#allocation4], 1 }

</bundles_post_ra>
